<compile_context>
chip_gen: v7x
topology: tpu7x:2x2x1
jax: 0.10.0
libtpu: 0.0.40
codegen_flags: <defaults>
</compile_context>

<pallas_src>
import functools

import jax
import jax.numpy as jnp
from jax.experimental import pallas as pl
from jax.experimental.pallas import tpu as pltpu

_LANES = 128
_SUBLANES = 8


def _round_up(x: int, m: int) -> int:
    return (x + m - 1) // m * m


def _cdiv(a: int, b: int) -> int:
    return -(-a // b)


# ----------------------------------------------------------------------------
# Kernel
# ----------------------------------------------------------------------------
def _mlp_head_kernel(h_ref, w1_ref, b1_ref, w2_ref, b2_ref, o_ref):
    # h_ref:  [TB, D_in]       (pipelined over the batch grid; ragged tail masked)
    # w1_ref: [D_in, H_pad]    b1_ref: [1, H_pad]      (VMEM-resident, lane-dense)
    # w2_ref: [H_pad, D_out]   b2_ref: [1, D_out]      (VMEM-resident)
    # o_ref:  [TB, D_out]      (unpadded; small masked store, 8x fewer HBM bytes)
    cdt = w1_ref.dtype
    x = h_ref[...].astype(cdt)  # in-VMEM cast -> no extra HBM pass for f32 inputs
    z1 = jnp.dot(x, w1_ref[...], preferred_element_type=jnp.float32) + b1_ref[...]
    a1 = jnp.maximum(z1, 0.0)   # ReLU; Dropout/BatchNorm elided (inference / disabled)
    z2 = jnp.dot(a1.astype(cdt), w2_ref[...],
                 preferred_element_type=jnp.float32) + b2_ref[...]
    o_ref[...] = z2.astype(o_ref.dtype)


# ----------------------------------------------------------------------------
# Parameter preparation (run once, at load time — hoisted out of the call path)
# ----------------------------------------------------------------------------
def prepare_proj_head_params(w1, b1, w2, b2, compute_dtype=jnp.bfloat16):
    """Pad the hidden dim to one lane-dense 128-wide vreg and cast weights to
    the compute dtype. Zero padding keeps the math exact (padded hidden columns
    stay 0 through ReLU and contribute 0 to the second matmul)."""
    D_in, H = w1.shape
    H2, D_out = w2.shape
    assert H == H2 and b1.shape == (H,) and b2.shape == (D_out,)
    H_pad = _round_up(H, _LANES)
    w1_p = jnp.zeros((D_in, H_pad), compute_dtype).at[:, :H].set(
        w1.astype(compute_dtype))
    b1_p = jnp.zeros((1, H_pad), jnp.float32).at[0, :H].set(b1.astype(jnp.float32))
    w2_p = jnp.zeros((H_pad, D_out), compute_dtype).at[:H, :].set(
        w2.astype(compute_dtype))
    b2_p = b2.astype(jnp.float32).reshape(1, D_out)
    return w1_p, b1_p, w2_p, b2_p


# ----------------------------------------------------------------------------
# Tiling heuristics
# ----------------------------------------------------------------------------
def _vmem_capacity_bytes() -> int:
    try:
        return int(pltpu.get_tpu_info().vmem_capacity_bytes)
    except Exception:
        return 64 * 1024 * 1024  # conservative: v7x per-core VMEM


def _batch_tile(B, D_in, D_out, h_itemsize, w_itemsize, block_b):
    # Even number of grid steps (>=2) for non-trivial B so the "parallel" batch
    # axis can be split across both v7x TensorCores; the extra ~0.35us step is
    # harmless on single-TC v5e/v6e. Tiny B -> a single tile.
    if B <= block_b:
        n_steps = 1 if B <= _SUBLANES else 2
    else:
        n_steps = 2 * _cdiv(B, 2 * block_b)
    tb = _round_up(_cdiv(B, n_steps), _SUBLANES)

    # Per-chip VMEM-aware cap (v7x: 64 MiB physical vs 128 MiB on v5e/v6e);
    # stay within the 32 MiB scoped default so no vmem_limit override is needed.
    budget = min(_vmem_capacity_bytes() // 4, 24 * 1024 * 1024)
    per_row = (
        2 * D_in * h_itemsize                 # double-buffered h tile
        + 2 * _round_up(D_out, _LANES) * 4    # double-buffered out tile (lane-padded)
        + 4 * _LANES * 4                      # z1 / a1 / z2 intermediates (upper bound)
    )
    tb_cap = max(_SUBLANES, (budget // per_row) // _SUBLANES * _SUBLANES)
    return min(tb, tb_cap)


# ----------------------------------------------------------------------------
# Pallas wrapper
# ----------------------------------------------------------------------------
@functools.partial(jax.jit, static_argnames=("block_b",))
def _proj_head_pallas(h, w1_p, b1_p, w2_p, b2_p, *, block_b=4096):
    B, D_in = h.shape
    H_pad = w1_p.shape[1]
    D_out = w2_p.shape[1]

    tb = _batch_tile(B, D_in, D_out,
                     jnp.dtype(h.dtype).itemsize,
                     jnp.dtype(w1_p.dtype).itemsize,
                     block_b)
    grid = (_cdiv(B, tb),)

    w_isz = jnp.dtype(w1_p.dtype).itemsize
    flops = 2 * B * (D_in * H_pad + H_pad * D_out)
    bytes_accessed = (
        B * D_in * jnp.dtype(h.dtype).itemsize          # h in
        + (D_in * H_pad + H_pad * D_out) * w_isz        # W1, W2
        + (H_pad + D_out) * 4                           # b1, b2
        + B * D_out * 4                                  # out
    )

    return pl.pallas_call(
        _mlp_head_kernel,
        out_shape=jax.ShapeDtypeStruct((B, D_out), jnp.float32),
        grid=grid,
        in_specs=[
            pl.BlockSpec((tb, D_in), lambda i: (i, 0)),       # h: batch-tiled, ragged tail masked
            pl.BlockSpec((D_in, H_pad), lambda i: (0, 0)),    # W1: VMEM-resident
            pl.BlockSpec((1, H_pad), lambda i: (0, 0)),       # b1
            pl.BlockSpec((H_pad, D_out), lambda i: (0, 0)),   # W2
            pl.BlockSpec((1, D_out), lambda i: (0, 0)),       # b2
        ],
        out_specs=pl.BlockSpec((tb, D_out), lambda i: (i, 0)),  # unpadded output
        compiler_params=pltpu.CompilerParams(
            dimension_semantics=("parallel",),
        ),
        cost_estimate=pl.CostEstimate(
            flops=flops, transcendentals=0, bytes_accessed=bytes_accessed
        ),
    )(h, w1_p, b1_p, w2_p, b2_p)


@jax.jit
def _proj_head_xla(h, w1_p, b1_p, w2_p, b2_p):
    # Tiny-batch path: XLA fuses the 2-layer MLP with no custom-call boundary.
    x = h.astype(w1_p.dtype)
    z1 = jnp.dot(x, w1_p, preferred_element_type=jnp.float32) + b1_p
    a1 = jnp.maximum(z1, 0.0)
    return jnp.dot(a1.astype(w2_p.dtype), w2_p,
                   preferred_element_type=jnp.float32) + b2_p


def dp_model_proj_head(h, params, *, block_b=4096, min_pallas_batch=256):
    """DPModel projection head: relu(h @ W1 + b1) @ W2 + b2.

    `params` must come from prepare_proj_head_params(). For tiny batches the
    pallas_call fixed cost dominates, so fall back to plain XLA; pass
    min_pallas_batch=0 to force the Pallas kernel.
    """
    w1_p, b1_p, w2_p, b2_p = params
    if h.shape[0] < min_pallas_batch:
        return _proj_head_xla(h, w1_p, b1_p, w2_p, b2_p)
    return _proj_head_pallas(h, w1_p, b1_p, w2_p, b2_p, block_b=block_b)


# ----------------------------------------------------------------------------
# Reference / test harness
# ----------------------------------------------------------------------------
def init_params(key, input_dim, hidden_dim, out_dim):
    """Deterministic synthetic init matching nn.Linear parameter shapes
    (PyTorch stores W as [out, in]; transpose to [in, out] for x @ W)."""
    k1, k2, k3, k4 = jax.random.split(key, 4)
    w1_pt = jax.random.normal(k1, (hidden_dim, input_dim), jnp.float32) * 0.05
    b1 = jax.random.normal(k2, (hidden_dim,), jnp.float32) * 0.05
    w2_pt = jax.random.normal(k3, (out_dim, hidden_dim), jnp.float32) * 0.05
    b2 = jax.random.normal(k4, (out_dim,), jnp.float32) * 0.05
    return w1_pt.T, b1, w2_pt.T, b2


def reference_proj_head(h, w1, b1, w2, b2, compute_dtype=jnp.float32):
    cdt = compute_dtype
    z1 = jnp.dot(h.astype(cdt), w1.astype(cdt),
                 preferred_element_type=jnp.float32) + b1
    a1 = jnp.maximum(z1, 0.0)
    return jnp.dot(a1.astype(cdt), w2.astype(cdt),
                   preferred_element_type=jnp.float32) + b2


if __name__ == "__main__":
    key = jax.random.PRNGKey(0)
    k_h, k_p = jax.random.split(key)

    batch = 8            # small batch
    input_dim = 32       # encoder.output_dim
    hidden_dim = 64      # config['hidden_size'] = [64]
    out_dim = 16         # DP task output dim

    # `h` stands in for the encoder output: self.encoder.encode_structure(drug)
    h = jax.random.normal(k_h, (batch, input_dim), jnp.float32)
    w1, b1, w2, b2 = init_params(k_p, input_dim, hidden_dim, out_dim)

    # --- default bf16 compute path (params padded once, outside the call path)
    params_bf16 = prepare_proj_head_params(w1, b1, w2, b2, jnp.bfloat16)
    # Force the Pallas kernel even at this tiny batch so it is exercised here.
    out = jax.block_until_ready(
        dp_model_proj_head(h, params_bf16, min_pallas_batch=0))
    assert out.shape == (batch, out_dim)
    ref_bf16 = reference_proj_head(h, w1, b1, w2, b2, jnp.bfloat16)
    ref_f32 = reference_proj_head(h, w1, b1, w2, b2, jnp.float32)
    assert jnp.allclose(out, ref_bf16, atol=2e-3, rtol=2e-3)
    assert jnp.allclose(out, ref_f32, atol=5e-2, rtol=5e-2)

    # --- exact f32 path (module-default numerics)
    params_f32 = prepare_proj_head_params(w1, b1, w2, b2, jnp.float32)
    out_f32 = jax.block_until_ready(
        dp_model_proj_head(h, params_f32, min_pallas_batch=0))
    assert jnp.allclose(out_f32, ref_f32, atol=1e-4, rtol=1e-4)

    # --- larger, non-multiple batch: ragged trailing tile + 2-step parallel grid
    k_h2, _ = jax.random.split(k_h)
    h_big = jax.random.normal(k_h2, (1000, input_dim), jnp.float32)
    out_big = jax.block_until_ready(dp_model_proj_head(h_big, params_bf16))
    assert out_big.shape == (1000, out_dim)
    ref_big = reference_proj_head(h_big, w1, b1, w2, b2, jnp.bfloat16)
    assert jnp.allclose(out_big, ref_big, atol=2e-3, rtol=2e-3)

    # --- tiny batch through the default dispatch (plain-XLA fallback)
    out_small = jax.block_until_ready(dp_model_proj_head(h, params_bf16))
    assert jnp.allclose(out_small, ref_bf16, atol=2e-3, rtol=2e-3)

    print("KERNEL_OK")
</pallas_src>

<mosaic_0001>
module attributes {stable_mosaic.version = 11 : i64} {
  func.func @_mlp_head_kernel(%arg0: i32, %arg1: memref<8x32xf32, #tpu.memory_space<vmem>>, %arg2: memref<32x128xbf16, #tpu.memory_space<vmem>>, %arg3: memref<1x128xf32, #tpu.memory_space<vmem>>, %arg4: memref<128x16xbf16, #tpu.memory_space<vmem>>, %arg5: memref<1x16xf32, #tpu.memory_space<vmem>>, %arg6: memref<8x16xf32, #tpu.memory_space<vmem>>) attributes {dimension_semantics = [#tpu.dimension_semantics<parallel>], iteration_bounds = array<i64: 1>, scalar_prefetch = 0 : i64, scratch_operands = 0 : i64, tpu.core_type = #tpu.core_type<tc>, window_params = [{transform_indices = @transform_0, window_bounds = array<i64: 8, 32>}, {pipeline_mode = #tpu.pipeline_mode<synchronous>, transform_indices = @transform_1, window_bounds = array<i64: 32, 128>}, {pipeline_mode = #tpu.pipeline_mode<synchronous>, transform_indices = @transform_2, window_bounds = array<i64: 1, 128>}, {pipeline_mode = #tpu.pipeline_mode<synchronous>, transform_indices = @transform_3, window_bounds = array<i64: 128, 16>}, {pipeline_mode = #tpu.pipeline_mode<synchronous>, transform_indices = @transform_4, window_bounds = array<i64: 1, 16>}, {transform_indices = @transform_5, window_bounds = array<i64: 8, 16>}]} {
    %c0 = arith.constant 0 : index
    %c0_0 = arith.constant 0 : index
    %0 = vector.load %arg1[%c0, %c0_0] : memref<8x32xf32, #tpu.memory_space<vmem>>, vector<8x32xf32>
    %1 = arith.truncf %0 : vector<8x32xf32> to vector<8x32xbf16>
    %c0_1 = arith.constant 0 : index
    %c0_2 = arith.constant 0 : index
    %2 = vector.load %arg2[%c0_1, %c0_2] : memref<32x128xbf16, #tpu.memory_space<vmem>>, vector<32x128xbf16>
    %cst = arith.constant dense<0.000000e+00> : vector<8x128xf32>
    %3 = tpu.matmul %1, %2, %cst {dimension_numbers = #tpu.dot_dimension_numbers<[1], [0], [0], [1], [0, 0, 1, 1], [], []>} : vector<8x32xbf16>, vector<32x128xbf16>, vector<8x128xf32> -> vector<8x128xf32>
    %c0_3 = arith.constant 0 : index
    %c0_4 = arith.constant 0 : index
    %4 = vector.load %arg3[%c0_3, %c0_4] : memref<1x128xf32, #tpu.memory_space<vmem>>, vector<1x128xf32>
    %5 = vector.broadcast %4 : vector<1x128xf32> to vector<8x128xf32>
    %6 = arith.addf %3, %5 : vector<8x128xf32>
    %cst_5 = arith.constant 0.000000e+00 : f32
    %7 = vector.broadcast %cst_5 : f32 to vector<8x128xf32>
    %8 = arith.maximumf %6, %7 : vector<8x128xf32>
    %9 = arith.truncf %8 : vector<8x128xf32> to vector<8x128xbf16>
    %c0_6 = arith.constant 0 : index
    %c0_7 = arith.constant 0 : index
    %10 = vector.load %arg4[%c0_6, %c0_7] : memref<128x16xbf16, #tpu.memory_space<vmem>>, vector<128x16xbf16>
    %cst_8 = arith.constant dense<0.000000e+00> : vector<8x16xf32>
    %11 = tpu.matmul %9, %10, %cst_8 {dimension_numbers = #tpu.dot_dimension_numbers<[1], [0], [0], [1], [0, 0, 1, 1], [], []>} : vector<8x128xbf16>, vector<128x16xbf16>, vector<8x16xf32> -> vector<8x16xf32>
    %c0_9 = arith.constant 0 : index
    %c0_10 = arith.constant 0 : index
    %12 = vector.load %arg5[%c0_9, %c0_10] : memref<1x16xf32, #tpu.memory_space<vmem>>, vector<1x16xf32>
    %13 = vector.broadcast %12 : vector<1x16xf32> to vector<8x16xf32>
    %14 = arith.addf %11, %13 : vector<8x16xf32>
    %c0_11 = arith.constant 0 : index
    %c0_12 = arith.constant 0 : index
    %15 = vector.load %arg6[%c0_11, %c0_12] : memref<8x16xf32, #tpu.memory_space<vmem>>, vector<8x16xf32>
    tpu.vector_store %arg6[%c0_11, %c0_12], %14 {strides = array<i32>} : memref<8x16xf32, #tpu.memory_space<vmem>>, vector<8x16xf32>,
    return
  }
  func.func @transform_0(%arg0: i32) -> (i32, i32) {
    %c0_i32 = arith.constant 0 : i32
    %c0_i32_0 = arith.constant 0 : i32
    return %arg0, %c0_i32 : i32, i32
  }
  func.func @transform_1(%arg0: i32) -> (i32, i32) {
    %c0_i32 = arith.constant 0 : i32
    %c0_i32_0 = arith.constant 0 : i32
    %c0_i32_1 = arith.constant 0 : i32
    return %c0_i32, %c0_i32_0 : i32, i32
  }
  func.func @transform_2(%arg0: i32) -> (i32, i32) {
    %c0_i32 = arith.constant 0 : i32
    %c0_i32_0 = arith.constant 0 : i32
    %c0_i32_1 = arith.constant 0 : i32
    return %c0_i32, %c0_i32_0 : i32, i32
  }
  func.func @transform_3(%arg0: i32) -> (i32, i32) {
    %c0_i32 = arith.constant 0 : i32
    %c0_i32_0 = arith.constant 0 : i32
    %c0_i32_1 = arith.constant 0 : i32
    return %c0_i32, %c0_i32_0 : i32, i32
  }
  func.func @transform_4(%arg0: i32) -> (i32, i32) {
    %c0_i32 = arith.constant 0 : i32
    %c0_i32_0 = arith.constant 0 : i32
    %c0_i32_1 = arith.constant 0 : i32
    return %c0_i32, %c0_i32_0 : i32, i32
  }
  func.func @transform_5(%arg0: i32) -> (i32, i32) {
    %c0_i32 = arith.constant 0 : i32
    %c0_i32_0 = arith.constant 0 : i32
    return %arg0, %c0_i32 : i32, i32
  }
}

</mosaic_0001>

<bundles_post_ra>
// kernel: _proj_head_pallas.1
= control target key start
LH: loop header
LB: loop body
LE: loop exit
PB: predicated region body
PF: predicated region fallthrough
CT: control target
= control target key end

     0   :  { %v310_v1 = vmov 0.0   ;;  %vm311_vm0 = vmmov 0   ;;  %vm47_vm1 = vcmask 261120   ;;  %s394_s0 = inlined_call_operand.vmem [shape: f32[8,32], index: 0, kind: input, shape index: {}]   ;;  %s395_s1 = inlined_call_operand.vmem [shape: bf16[32,128], index: 1, kind: input, shape index: {}]   ;;  %s396_s2 = inlined_call_operand.vmem [shape: f32[1,128], index: 2, kind: input, shape index: {}]   ;;  %s397_s3 = inlined_call_operand.vmem [shape: bf16[128,16], index: 3, kind: input, shape index: {}]   ;;  %s398_s4 = inlined_call_operand.vmem [shape: f32[1,16], index: 4, kind: input, shape index: {}]   ;;  %s399_s5 = inlined_call_operand.hbm [shape: f32[8,16], index: 5, kind: output, shape index: {}]  }
   0x1   :  { %v276_v0 = vld [vmem:[%s395_s1] sm:$0xff]   ;;  %245 = vmatprep.subr.bf16.mxu0 %v310_v1  ;;  %v277_v2 = vld [vmem:[%s395_s1 + $0x8] sm:$0xff]   ;;  %253 = vmatprep.subr.bf16.mxu1 %v310_v1  ;;  %v280_v7 = vld [vmem:[%s397_s3 + $0x10] sm:$0xff]  }
   0x2   :  { %246 = vmatpush3.bf16.msra.mxu0 %v276_v0  ;;  %249 = vmatprep.mubr.msk.bf16.mxu0 %vm311_vm0, %v310_v1  ;;  %v22_v3 = vld [vmem:[%s394_s0] sm:$0xff]  ;;  %v279_v6 = vld [vmem:[%s397_s3 + $0x8] sm:$0xff]  }
   0x3   :  { %247 = vmatprep.subr.bf16.mxu0 %v310_v1  ;;  %v278_v4 = vld [vmem:[%s397_s3] sm:$0xff]   ;;  %269 = vmatprep.mubr.msk.bf16.mxu1 %vm311_vm0, %v310_v1  ;;  %v23_v5 = vpack.c.bf16 %v22_v3, %v22_v3 }
   0x4   :  { %254 = vmatpush3.bf16.msra.mxu1 %v278_v4 }
   0x5   :  { %255 = vmatprep.subr.bf16.mxu1 %v310_v1 }
   0x6   :  { %248 = vmatpush3.bf16.msra.mxu0 %v277_v2 }
   0x8   :  { %256 = vmatpush3.bf16.msra.mxu1 %v279_v6 }
   0x9   :  { %250 = vmatmul.mubr.msk.bf16.vlgmr.msra.gmra.mrb[0].mxu0 %vm47_vm1, %v23_v5  ;;  %257 = vmatprep.subr.bf16.mxu1 %v310_v1 }
   0xa   :  { %10 = vsyncpa [#allocation3], 0  ;;  %v281_v8 = vld [vmem:[%s397_s3 + $0x18] sm:$0xff]   ;;  %v282_v9 = vld [vmem:[%s397_s3 + $0x20] sm:$0xff]   ;;  %s312_s17 = smov [#allocation2]   ;;  %vm204_vm2 = vcmask 130048  }
   0xb   :  { %v283_v10 = vld [vmem:[%s397_s3 + $0x28] sm:$0xff]   ;;  %v284_v11 = vld [vmem:[%s397_s3 + $0x30] sm:$0xff]   ;;  %v285_v12 = vld [vmem:[%s397_s3 + $0x38] sm:$0xff]   ;;  %s212_s18 = sshll.u32 %s312_s17, 4  ;;  %s213_s18 = int_to_ptr.vmem [resolvable:$true] %s212_s18 }
   0xc   :  { %258 = vmatpush3.bf16.msra.mxu1 %v280_v7  ;;  %v220_v13 = vld [vmem:[%s396_s2] ss:$0 sm:$0xff]  ;;  %s286_s2 = scalar_lea.vmem %s213_s18, 128  ;;  %p291_p1 = scmp.lt.s32.totalorder %s213_s18, %s213_s18 }
   0xd   :  { %259 = vmatprep.subr.bf16.mxu1 %v310_v1  ;;  %v224_v21 = vld [vmem:[%s398_s4] ss:$0 sm:$0xff]  ;;  %p287_p0 = scmp.ne.s32.totalorder %s213_s18, %s286_s2  ;;  %p292_p2 = scmp.lt.s32.totalorder %s286_s2, %s286_s2 }
   0xf   :  { %p293_p3 = por %p292_p2, %p291_p1 }
  0x10   :  { %260 = vmatpush3.bf16.msra.mxu1 %v281_v8 }
  0x11   :  { %261 = vmatprep.subr.bf16.mxu1 %v310_v1  ;;  %p294_p4 = pnand %p293_p3, %p287_p0 }
  0x14   :  { %262 = vmatpush3.bf16.msra.mxu1 %v282_v9 }
  0x15   :  { %263 = vmatprep.subr.bf16.mxu1 %v310_v1 }
  0x18   :  { %264 = vmatpush3.bf16.msra.mxu1 %v283_v10 }
  0x19   :  { %265 = vmatprep.subr.bf16.mxu1 %v310_v1 }
  0x1c   :  { %266 = vmatpush3.bf16.msra.mxu1 %v284_v11 }
  0x1d   :  { %267 = vmatprep.subr.bf16.mxu1 %v310_v1 }
  0x20   :  { %268 = vmatpush3.bf16.msra.mxu1 %v285_v12 }
  0xdc   :  { %v85_v14 = vpop.f32.mrb[0].mxu0 }
  0xdd   :  { %v86_v15 = vadd.f32 %v220_v13, %v85_v14  ;;  %v251_v16 = vpop.f32.mrb[1].mxu0 }
  0xde   :  { %v88_v17 = vpop.f32.mrb[2].mxu0 }
  0xdf   :  { %v91_v18 = vmax.f32 %v86_v15, 0.0  ;;  %v252_v19 = vpop.f32.mrb[3].mxu0 }
  0xe1   :  { %v92_v20 = vpack.c.bf16 %v91_v18, %v91_v18 }
  0xe3   :  { %270 = vmatmul.mubr.bf16.vlgmr.msra.gmra.mrb[0].mxu1 %v92_v20 }
 0x1b6   :  { %v198_v22 = vpop.f32.mrb[0].mxu1 }
 0x1b7   :  { %v199_v23 = vadd.f32 %v224_v21, %v198_v22  ;;  %v271_v24 = vpop.f32.mrb[1].mxu1 }
 0x1b8   :  { %v201_v25 = vpop.f32.mrb[2].mxu1 }
 0x1b9   :  { %v272_v26 = vpop.f32.mrb[3].mxu1  ;;  %205 = vst.msk [vmem:[#allocation2] sm:$0xff] %vm204_vm2, %v199_v23 }
 0x1ba   :  { %297 = shalt.err (!%p294_p4)
}
 0x1bb   :  { %s298_s4 = scalar_lea.hbm %s399_s5, 128 }
 0x1bc   :  { %p299_p5 = scmp.ne.s32.totalorder %s399_s5, %s298_s4  ;;  %p302_p6 = scmp.lt.u32.totalorder %s298_s4, %s399_s5 }
 0x1be   :  { %p304_p7 = pnand %p302_p6, %p299_p5 }
 0x1c0   :  { %307 = shalt.err (!%p304_p7)
}
 0x1c1   :  { %215 = dma.vmem_to_hbm [thread:$0]  %s213_s18, 128, %s399_s5, [#allocation3]  }
 0x1c2   :  { %308 = dma.done.wait [#allocation3], 128  }
 0x1c3   :  { %309 = vsyncadd [#allocation3], 4294967168 }
 0x1c4   :  { %219 = vsyncpa [#allocation3], 1 }

</bundles_post_ra>
